<compile_context>
chip_gen: v7x
topology: tpu7x:2x2x1
jax: 0.10.0
libtpu: 0.0.40
codegen_flags: <defaults>
</compile_context>

<pallas_src>
import functools

import jax
import jax.numpy as jnp
from jax import lax
from jax.experimental import pallas as pl
from jax.experimental.pallas import tpu as pltpu


def _round_up(v: int, m: int) -> int:
    return -(-v // m) * m


def _mlp_kernel(*refs, num_layers: int, transpose_out: bool):
    # refs = (x_ref, w0, b0, w1, b1, ..., w_{L-1}, b_{L-1}, o_ref)
    x_ref = refs[0]
    o_ref = refs[-1]
    params = refs[1:-1]

    h = x_ref[...]                      # (tn, d_in), native dtype for the MXU
    act_dtype = h.dtype

    for i in range(num_layers):         # static unroll over layers
        w = params[2 * i][...]
        b = params[2 * i + 1][...]
        last = i == num_layers - 1

        if last and transpose_out:
            # w is pre-transposed to (d_out, d_in); contract the last dims of
            # both operands (A @ B^T) -> (d_out, tn): the row tile lands on the
            # lane axis, giving dense stores + a contiguous writeback DMA.
            acc = lax.dot_general(w, h, (((1,), (1,)), ((), ())),
                                  preferred_element_type=jnp.float32)
            o_ref[...] = (acc + b.astype(jnp.float32)).astype(o_ref.dtype)
        else:
            acc = jnp.dot(h, w, preferred_element_type=jnp.float32)
            acc = acc + b.astype(jnp.float32)          # b: (1, d_out)
            if last:
                o_ref[...] = acc.astype(o_ref.dtype)
            else:
                # ReLU in f32, then back to the activation dtype for the next dot.
                h = jnp.maximum(acc, 0.0).astype(act_dtype)


def mlp_forward(x, weights, biases, *, tile_n: int = 1024):
    """Pallas implementation of MLP.forward(x).

    x:        (..., input_dim)
    weights:  list of (d_in_i, d_out_i) arrays (i.e. torch Linear weight^T)
    biases:   list of (d_out_i,) arrays
    returns:  (..., output_dim)
    """
    num_layers = len(weights)
    assert len(biases) == num_layers and num_layers >= 1

    in_dim = weights[0].shape[0]
    out_dim = weights[-1].shape[1]
    orig_shape = x.shape
    assert orig_shape[-1] == in_dim, "last dim must equal input_dim"

    x2 = x.reshape(-1, in_dim)                       # (n, in_dim), free reshape
    n = x2.shape[0]
    itemsize = jnp.dtype(x.dtype).itemsize

    # Lane-dense writeback for narrow heads (see kernel).
    transpose_out = out_dim < 128

    # ---- Row-tile selection from an explicit VMEM budget --------------------
    LANE = 128
    w_bytes = sum(w.size * w.dtype.itemsize + b.size * b.dtype.itemsize
                  for w, b in zip(weights, biases))
    max_dim = max([in_dim, out_dim] + [w.shape[1] for w in weights])

    def vmem_estimate(tn):
        io = 2 * tn * (in_dim + out_dim) * itemsize   # double-buffered in/out blocks
        interm = 2 * tn * max_dim * 4                 # live f32 activations / accumulator
        return io + 2 * w_bytes + interm              # weights double-buffered by pipeliner

    budget = 48 * 1024 * 1024   # headroom under v7x's 64 MiB physical VMEM

    if n >= 2 * LANE:
        # Multiple 128-aligned row tiles; capping at ~ceil(n/2) guarantees
        # grid_n >= 2 so both v7x TensorCores get work on the parallel axis.
        cap = _round_up(-(-n // 2), LANE)
        tn = max(LANE, min(_round_up(tile_n, LANE), cap))
        while tn > LANE and vmem_estimate(tn) > budget:
            tn = max(LANE, _round_up(tn // 2, LANE))
        # NOTE: if the resident weights alone approach the budget, the big
        # layers should be K/N-tiled with an accumulator scratch instead of
        # full-extent resident blocks (not needed for head-sized MLPs).
    else:
        tn = n                  # single full-extent block (always a legal shape)
    grid_n = -(-n // tn)        # ragged tail handled by Pallas edge blocks

    vmem_limit = int(min(64 * 1024 * 1024,
                         max(32 * 1024 * 1024, 3 * vmem_estimate(tn) // 2)))

    # ---- Operands & specs ----------------------------------------------------
    hidden_b = [b.reshape(1, -1) for b in biases[:-1]]
    if transpose_out:
        w_last = weights[-1].T                       # (out_dim, d_in_last), tiny
        b_last = biases[-1].reshape(-1, 1)           # (out_dim, 1)
        out_shape = jax.ShapeDtypeStruct((out_dim, n), x.dtype)
        out_spec = pl.BlockSpec((out_dim, tn), lambda i: (0, i))
    else:
        w_last = weights[-1]
        b_last = biases[-1].reshape(1, -1)
        out_shape = jax.ShapeDtypeStruct((n, out_dim), x.dtype)
        out_spec = pl.BlockSpec((tn, out_dim), lambda i: (i, 0))

    in_specs = [pl.BlockSpec((tn, in_dim), lambda i: (i, 0))]
    operands = [x2]
    for w, b in zip(list(weights[:-1]) + [w_last], hidden_b + [b_last]):
        # Constant index map -> weight/bias blocks stay resident in VMEM.
        in_specs.append(pl.BlockSpec(w.shape, lambda i: (0, 0)))
        in_specs.append(pl.BlockSpec(b.shape, lambda i: (0, 0)))
        operands += [w, b]

    kernel = functools.partial(_mlp_kernel, num_layers=num_layers,
                               transpose_out=transpose_out)

    out = pl.pallas_call(
        kernel,
        out_shape=out_shape,
        grid_spec=pltpu.PrefetchScalarGridSpec(
            num_scalar_prefetch=0,
            grid=(grid_n,),
            in_specs=in_specs,
            out_specs=out_spec,
        ),
        compiler_params=pltpu.CompilerParams(
            dimension_semantics=("parallel",),
            vmem_limit_bytes=vmem_limit,
        ),
    )(*operands)

    if transpose_out:
        out = out.T                      # small (n, out_dim) copy; output is 8x
                                         # smaller than the input read.
    return out.reshape(list(orig_shape[:-1]) + [out_dim])


def _mlp_ref(x, weights, biases):
    """Pure-JAX reference mirroring the PyTorch module."""
    h = x
    num_layers = len(weights)
    for i, (w, b) in enumerate(zip(weights, biases)):
        h = jnp.dot(h, w) + b
        if i < num_layers - 1:
            h = jnp.maximum(h, 0.0)
    return h.astype(x.dtype)


if __name__ == "__main__":
    # Decoder bbox-head style MLP.
    batch, seq = 2, 8
    input_dim, hidden_dim, output_dim, num_layers = 32, 32, 4, 3

    dims_in = [input_dim] + [hidden_dim] * (num_layers - 1)
    dims_out = [hidden_dim] * (num_layers - 1) + [output_dim]

    key = jax.random.PRNGKey(0)
    keys = jax.random.split(key, 2 + 2 * num_layers)

    x = jax.random.normal(keys[0], (batch, seq, input_dim), dtype=jnp.float32)

    weights, biases = [], []
    for li, (d_in, d_out) in enumerate(zip(dims_in, dims_out)):
        scale = 1.0 / (d_in ** 0.5)
        weights.append(jax.random.uniform(keys[1 + 2 * li], (d_in, d_out),
                                          jnp.float32, -scale, scale))
        biases.append(jax.random.uniform(keys[2 + 2 * li], (d_out,),
                                         jnp.float32, -scale, scale))

    # Small case (n = 16 rows -> single full-extent block).
    out = jax.block_until_ready(mlp_forward(x, weights, biases))
    ref = _mlp_ref(x, weights, biases)
    assert out.shape == (batch, seq, output_dim), out.shape
    assert jnp.allclose(out, ref, atol=2e-4, rtol=2e-4), (
        float(jnp.max(jnp.abs(out - ref))))

    # Larger / ragged case exercising the multi-tile grid (grid_n = 2) and the
    # masked edge block (n = 300 is not a multiple of the row tile).
    xb = jax.random.normal(keys[-1], (300, input_dim), dtype=jnp.float32)
    outb = jax.block_until_ready(mlp_forward(xb, weights, biases))
    refb = _mlp_ref(xb, weights, biases)
    assert outb.shape == (300, output_dim), outb.shape
    assert jnp.allclose(outb, refb, atol=2e-4, rtol=2e-4), (
        float(jnp.max(jnp.abs(outb - refb))))

    print("KERNEL_OK")
</pallas_src>

<mosaic_0001>
module attributes {stable_mosaic.version = 11 : i64} {
  func.func @_mlp_kernel(%arg0: i32, %arg1: memref<16x32xf32, #tpu.memory_space<vmem>>, %arg2: memref<32x32xf32, #tpu.memory_space<vmem>>, %arg3: memref<1x32xf32, #tpu.memory_space<vmem>>, %arg4: memref<32x32xf32, #tpu.memory_space<vmem>>, %arg5: memref<1x32xf32, #tpu.memory_space<vmem>>, %arg6: memref<4x32xf32, #tpu.memory_space<vmem>>, %arg7: memref<4x1xf32, #tpu.memory_space<vmem>>, %arg8: memref<4x16xf32, #tpu.memory_space<vmem>>) attributes {dimension_semantics = [#tpu.dimension_semantics<parallel>], iteration_bounds = array<i64: 1>, scalar_prefetch = 0 : i64, scratch_operands = 0 : i64, tpu.core_type = #tpu.core_type<tc>, window_params = [{transform_indices = @transform_0, window_bounds = array<i64: 16, 32>}, {pipeline_mode = #tpu.pipeline_mode<synchronous>, transform_indices = @transform_1, window_bounds = array<i64: 32, 32>}, {pipeline_mode = #tpu.pipeline_mode<synchronous>, transform_indices = @transform_2, window_bounds = array<i64: 1, 32>}, {pipeline_mode = #tpu.pipeline_mode<synchronous>, transform_indices = @transform_3, window_bounds = array<i64: 32, 32>}, {pipeline_mode = #tpu.pipeline_mode<synchronous>, transform_indices = @transform_4, window_bounds = array<i64: 1, 32>}, {pipeline_mode = #tpu.pipeline_mode<synchronous>, transform_indices = @transform_5, window_bounds = array<i64: 4, 32>}, {pipeline_mode = #tpu.pipeline_mode<synchronous>, transform_indices = @transform_6, window_bounds = array<i64: 4, 1>}, {transform_indices = @transform_7, window_bounds = array<i64: 4, 16>}]} {
    %c0 = arith.constant 0 : index
    %c0_0 = arith.constant 0 : index
    %0 = vector.load %arg1[%c0, %c0_0] : memref<16x32xf32, #tpu.memory_space<vmem>>, vector<16x32xf32>
    %c0_1 = arith.constant 0 : index
    %c0_2 = arith.constant 0 : index
    %1 = vector.load %arg2[%c0_1, %c0_2] : memref<32x32xf32, #tpu.memory_space<vmem>>, vector<32x32xf32>
    %c0_3 = arith.constant 0 : index
    %c0_4 = arith.constant 0 : index
    %2 = vector.load %arg3[%c0_3, %c0_4] : memref<1x32xf32, #tpu.memory_space<vmem>>, vector<1x32xf32>
    %cst = arith.constant dense<0.000000e+00> : vector<16x32xf32>
    %3 = tpu.matmul %0, %1, %cst {dimension_numbers = #tpu.dot_dimension_numbers<[1], [0], [0], [1], [0, 0, 1, 1], [], []>} : vector<16x32xf32>, vector<32x32xf32>, vector<16x32xf32> -> vector<16x32xf32>
    %4 = vector.broadcast %2 : vector<1x32xf32> to vector<16x32xf32>
    %5 = arith.addf %3, %4 : vector<16x32xf32>
    %cst_5 = arith.constant 0.000000e+00 : f32
    %6 = vector.broadcast %cst_5 : f32 to vector<16x32xf32>
    %7 = arith.maximumf %5, %6 : vector<16x32xf32>
    %c0_6 = arith.constant 0 : index
    %c0_7 = arith.constant 0 : index
    %8 = vector.load %arg4[%c0_6, %c0_7] : memref<32x32xf32, #tpu.memory_space<vmem>>, vector<32x32xf32>
    %c0_8 = arith.constant 0 : index
    %c0_9 = arith.constant 0 : index
    %9 = vector.load %arg5[%c0_8, %c0_9] : memref<1x32xf32, #tpu.memory_space<vmem>>, vector<1x32xf32>
    %cst_10 = arith.constant dense<0.000000e+00> : vector<16x32xf32>
    %10 = tpu.matmul %7, %8, %cst_10 {dimension_numbers = #tpu.dot_dimension_numbers<[1], [0], [0], [1], [0, 0, 1, 1], [], []>} : vector<16x32xf32>, vector<32x32xf32>, vector<16x32xf32> -> vector<16x32xf32>
    %11 = vector.broadcast %9 : vector<1x32xf32> to vector<16x32xf32>
    %12 = arith.addf %10, %11 : vector<16x32xf32>
    %cst_11 = arith.constant 0.000000e+00 : f32
    %13 = vector.broadcast %cst_11 : f32 to vector<16x32xf32>
    %14 = arith.maximumf %12, %13 : vector<16x32xf32>
    %c0_12 = arith.constant 0 : index
    %c0_13 = arith.constant 0 : index
    %15 = vector.load %arg6[%c0_12, %c0_13] : memref<4x32xf32, #tpu.memory_space<vmem>>, vector<4x32xf32>
    %c0_14 = arith.constant 0 : index
    %c0_15 = arith.constant 0 : index
    %16 = vector.load %arg7[%c0_14, %c0_15] : memref<4x1xf32, #tpu.memory_space<vmem>>, vector<4x1xf32>
    %cst_16 = arith.constant dense<0.000000e+00> : vector<4x16xf32>
    %17 = tpu.matmul %15, %14, %cst_16 {dimension_numbers = #tpu.dot_dimension_numbers<[1], [1], [0], [0], [0, 0, 1, 0], [], []>} : vector<4x32xf32>, vector<16x32xf32>, vector<4x16xf32> -> vector<4x16xf32>
    %18 = vector.broadcast %16 : vector<4x1xf32> to vector<4x16xf32>
    %19 = arith.addf %17, %18 : vector<4x16xf32>
    %c0_17 = arith.constant 0 : index
    %c0_18 = arith.constant 0 : index
    %20 = vector.load %arg8[%c0_17, %c0_18] : memref<4x16xf32, #tpu.memory_space<vmem>>, vector<4x16xf32>
    tpu.vector_store %arg8[%c0_17, %c0_18], %19 {strides = array<i32>} : memref<4x16xf32, #tpu.memory_space<vmem>>, vector<4x16xf32>,
    return
  }
  func.func @transform_0(%arg0: i32) -> (i32, i32) {
    %c0_i32 = arith.constant 0 : i32
    %c0_i32_0 = arith.constant 0 : i32
    return %arg0, %c0_i32 : i32, i32
  }
  func.func @transform_1(%arg0: i32) -> (i32, i32) {
    %c0_i32 = arith.constant 0 : i32
    %c0_i32_0 = arith.constant 0 : i32
    %c0_i32_1 = arith.constant 0 : i32
    return %c0_i32, %c0_i32_0 : i32, i32
  }
  func.func @transform_2(%arg0: i32) -> (i32, i32) {
    %c0_i32 = arith.constant 0 : i32
    %c0_i32_0 = arith.constant 0 : i32
    %c0_i32_1 = arith.constant 0 : i32
    return %c0_i32, %c0_i32_0 : i32, i32
  }
  func.func @transform_3(%arg0: i32) -> (i32, i32) {
    %c0_i32 = arith.constant 0 : i32
    %c0_i32_0 = arith.constant 0 : i32
    %c0_i32_1 = arith.constant 0 : i32
    return %c0_i32, %c0_i32_0 : i32, i32
  }
  func.func @transform_4(%arg0: i32) -> (i32, i32) {
    %c0_i32 = arith.constant 0 : i32
    %c0_i32_0 = arith.constant 0 : i32
    %c0_i32_1 = arith.constant 0 : i32
    return %c0_i32, %c0_i32_0 : i32, i32
  }
  func.func @transform_5(%arg0: i32) -> (i32, i32) {
    %c0_i32 = arith.constant 0 : i32
    %c0_i32_0 = arith.constant 0 : i32
    %c0_i32_1 = arith.constant 0 : i32
    return %c0_i32, %c0_i32_0 : i32, i32
  }
  func.func @transform_6(%arg0: i32) -> (i32, i32) {
    %c0_i32 = arith.constant 0 : i32
    %c0_i32_0 = arith.constant 0 : i32
    %c0_i32_1 = arith.constant 0 : i32
    return %c0_i32, %c0_i32_0 : i32, i32
  }
  func.func @transform_7(%arg0: i32) -> (i32, i32) {
    %c0_i32 = arith.constant 0 : i32
    %c0_i32_0 = arith.constant 0 : i32
    return %c0_i32, %arg0 : i32, i32
  }
}

</mosaic_0001>

<bundles_post_ra>
// kernel: tpu_custom_call.1
= control target key start
LH: loop header
LB: loop body
LE: loop exit
PB: predicated region body
PF: predicated region fallthrough
CT: control target
= control target key end

     0   :  { %12 = vsyncpa [#allocation3], 0  ;;  %s674_s0 = inlined_call_operand.hbm [shape: f32[16,32], index: 0, kind: input, shape index: {}]   ;;  %s675_s1 = inlined_call_operand.hbm [shape: f32[32,32], index: 1, kind: input, shape index: {}]   ;;  %s676_s2 = inlined_call_operand.vmem [shape: f32[1,32], index: 2, kind: input, shape index: {}]   ;;  %s677_s3 = inlined_call_operand.hbm [shape: f32[32,32], index: 3, kind: input, shape index: {}]   ;;  %s678_s4 = inlined_call_operand.vmem [shape: f32[1,32], index: 4, kind: input, shape index: {}]   ;;  %s679_s5 = inlined_call_operand.vmem [shape: f32[4,32], index: 5, kind: input, shape index: {}]   ;;  %s680_s6 = inlined_call_operand.vmem [shape: f32[4,1], index: 6, kind: input, shape index: {}]   ;;  %s681_s7 = inlined_call_operand.hbm [shape: f32[4,16], index: 7, kind: output, shape index: {}]  }
   0x1   :  { %13 = vsyncpa [#allocation6], 0 }
   0x2   :  { %14 = vsyncpa [#allocation4], 0  ;;  %s541_s24 = smov [#allocation5]   ;;  %s542_s26 = smov [#allocation2]  }
   0x3   :  { %s32_s25 = sshll.u32 %s541_s24, 4  ;;  %s20_s27 = sshll.u32 %s542_s26, 4  ;;  %s33_s25 = int_to_ptr.vmem [resolvable:$true] %s32_s25  ;;  %s591_s27 = int_to_ptr.vmem [resolvable:$true] %s20_s27 }
   0x4   :  { %s447_s30 = scalar_lea.hbm %s675_s1, 512 }
   0x5   :  { %p448_p0 = scmp.ne.s32.totalorder %s675_s1, %s447_s30  ;;  %p451_p1 = scmp.lt.u32.totalorder %s447_s30, %s675_s1 }
   0x7   :  { %p453_p2 = pnand %p451_p1, %p448_p0 }
   0x9   :  { %456 = shalt.err (!%p453_p2)
}
   0xa   :  { %s457_s12 = scalar_lea.vmem %s33_s25, 512  ;;  %p462_p4 = scmp.lt.s32.totalorder %s33_s25, %s33_s25 }
   0xb   :  { %p458_p3 = scmp.ne.s32.totalorder %s33_s25, %s457_s12  ;;  %p463_p5 = scmp.lt.s32.totalorder %s457_s12, %s457_s12 }
   0xd   :  { %p464_p6 = por %p463_p5, %p462_p4 }
   0xf   :  { %p465_p7 = pnand %p464_p6, %p458_p3 }
  0x11   :  { %468 = shalt.err (!%p465_p7)
}
  0x12   :  { %s543_s13 = smov 128   ;;  %s544_s14 = smov 8  }
  0x13   :  { %38 = dma.hbm_to_vmem [thread:$0]  %s675_s1, 512, %s33_s25, [#allocation6], %s543_s13, %s543_s13, %s544_s14  }
  0x14   :  { %s469_s19 = scalar_lea.hbm %s674_s0, 256 }
  0x15   :  { %p470_p8 = scmp.ne.s32.totalorder %s674_s0, %s469_s19  ;;  %p473_p9 = scmp.lt.u32.totalorder %s469_s19, %s674_s0 }
  0x17   :  { %p475_p10 = pnand %p473_p9, %p470_p8 }
  0x19   :  { %478 = shalt.err (!%p475_p10)
}
  0x1a   :  { %s479_s24 = scalar_lea.vmem %s591_s27, 256  ;;  %p484_p12 = scmp.lt.s32.totalorder %s591_s27, %s591_s27 }
  0x1b   :  { %p480_p11 = scmp.ne.s32.totalorder %s591_s27, %s479_s24  ;;  %p485_p13 = scmp.lt.s32.totalorder %s479_s24, %s479_s24 }
  0x1d   :  { %p486_p0 = por %p485_p13, %p484_p12 }
  0x1f   :  { %p487_p1 = pnand %p486_p0, %p480_p11 }
  0x21   :  { %490 = shalt.err (!%p487_p1)
}
  0x22   :  { %26 = dma.hbm_to_vmem [thread:$0]  %s674_s0, 256, %s591_s27, [#allocation3], %s543_s13, %s543_s13, %s544_s14  }
  0x23   :  { %s545_s26 = smov [#allocation7]   ;;  %s491_s8 = scalar_lea.hbm %s677_s3, 512 }
  0x24   :  { %s46_s28 = sshll.u32 %s545_s26, 4  ;;  %p492_p2 = scmp.ne.s32.totalorder %s677_s3, %s491_s8  ;;  %s47_s28 = int_to_ptr.vmem [resolvable:$true] %s46_s28 }
  0x25   :  { %p495_p3 = scmp.lt.u32.totalorder %s491_s8, %s677_s3 }
  0x27   :  { %p497_p4 = pnand %p495_p3, %p492_p2 }
  0x29   :  { %500 = shalt.err (!%p497_p4)
}
  0x2a   :  { %s501_s15 = scalar_lea.vmem %s47_s28, 512  ;;  %p506_p6 = scmp.lt.s32.totalorder %s47_s28, %s47_s28 }
  0x2b   :  { %p502_p5 = scmp.ne.s32.totalorder %s47_s28, %s501_s15  ;;  %p507_p7 = scmp.lt.s32.totalorder %s501_s15, %s501_s15 }
  0x2d   :  { %p508_p8 = por %p507_p7, %p506_p6 }
  0x2f   :  { %p509_p9 = pnand %p508_p8, %p502_p5 }
  0x31   :  { %512 = shalt.err (!%p509_p9)
}
  0x32   :  { %52 = dma.hbm_to_vmem [thread:$0]  %s677_s3, 512, %s47_s28, [#allocation6], %s543_s13, %s543_s13, %s544_s14  }
  0x33   :  { %535 = dma.done.wait [#allocation3], 256  }
  0x34   :  { %536 = vsyncadd [#allocation3], 4294967040 }
  0x35   :  { %537 = dma.done.wait [#allocation6], 1024  }
  0x36   :  { %538 = vsyncadd [#allocation6], 4294966272  ;;  %vm81_vm0 = vcmask 261120   ;;  %v70_v0 = vld [vmem:[#allocation5] sm:$0xff]  ;;  %v71_v1 = vld [vmem:[#allocation5 + $0x8] sm:$0xff]  ;;  %v546_v21 = vmov 0.0|0.0  }
  0x37   :  { %v72_v2 = vld [vmem:[#allocation5 + $0x10] sm:$0xff]  ;;  %v416_v3 = vpack.c.bf16 %v71_v1, %v70_v0  ;;  %v73_v4 = vld [vmem:[#allocation5 + $0x18] sm:$0xff]  ;;  %v165_v7 = vld [vmem:[#allocation7] sm:$0xff]  ;;  %vm547_vm1 = vmmov 0   ;;  %v548_v22 = vmov 0.0   ;;  %v549_v24 = vmov 0  }
  0x38   :  { %v68_v5 = vld [vmem:[#allocation2] sm:$0xff]  ;;  %v420_v6 = vpack.c.bf16 %v73_v4, %v72_v2  ;;  %v166_v8 = vld [vmem:[#allocation7 + $0x8] sm:$0xff]  ;;  %v69_v10 = vld [vmem:[#allocation2 + $0x8] sm:$0xff]  ;;  %446 = vset.pattern.permute.xlu0 %v549_v24  ;;  %s550_s19 = smov [#allocation8]   ;;  %vm345_vm3 = vcmask 125952  }
  0x39   :  { %395 = vmatprep.mubr.msk.f32.mxu0 %vm81_vm0, %v68_v5  ;;  %417 = vmatprep.subr.bf16.mxu0 %v416_v3  ;;  %v424_v9 = vpack.c.bf16 %v166_v8, %v165_v7  ;;  %v167_v11 = vld [vmem:[#allocation7 + $0x10] sm:$0xff]  ;;  %v168_v12 = vld [vmem:[#allocation7 + $0x18] sm:$0xff]  ;;  %vm434_vm2 = vmpackc.low %vm81_vm0, %vm81_vm0 }
  0x3a   :  { %419 = vmatpush3.bf16.msra.mxu0 %v416_v3  ;;  %v428_v13 = vpack.c.bf16 %v168_v12, %v167_v11  ;;  %v363_v14 = vld [vmem:[%s676_s2] ss:$0 sm:$0xff] }
  0x3b   :  { %421 = vmatprep.subr.bf16.mxu0 %v420_v6  ;;  %425 = vmatprep.subr.bf16.mxu1 %v424_v9  ;;  %v260_v23 = vld [vmem:[%s680_s6] sm:$0xf] }
  0x3c   :  { %427 = vmatpush3.bf16.msra.mxu1 %v424_v9  ;;  %263 = vperm.xlu0 %446, %v260_v23   ;;  %v366_v25 = vld [vmem:[%s678_s4] ss:$0 sm:$0xff]  ;;  %s353_s4 = sshll.u32 %s550_s19, 4  ;;  %s354_s4 = int_to_ptr.vmem [resolvable:$true] %s353_s4 }
  0x3d   :  { %429 = vmatprep.subr.bf16.mxu1 %v428_v13  ;;  %v259_v33 = vld [vmem:[%s679_s5] sm:$0xf]  ;;  %s513_s20 = scalar_lea.vmem %s354_s4, 64  ;;  %p518_p11 = scmp.lt.s32.totalorder %s354_s4, %s354_s4 }
  0x3e   :  { %423 = vmatpush3.bf16.msra.mxu0 %v420_v6  ;;  %p514_p10 = scmp.ne.s32.totalorder %s354_s4, %s513_s20  ;;  %p519_p12 = scmp.lt.s32.totalorder %s513_s20, %s513_s20 }
  0x3f   :  { %432 = vmatprep.subr.bf16.mxu0 %v546_v21 }
  0x40   :  { %431 = vmatpush3.bf16.msra.mxu1 %v428_v13  ;;  %p520_p13 = por %p519_p12, %p518_p11 }
  0x41   :  { %396 = vmatmul.mubr.msk.f32.vlgmr.msra.gmra.mrb[0].mxu0 %vm81_vm0, %v69_v10 }
  0x42   :  { %413 = vmatprep.mubr.msk.f32.mxu0 %vm547_vm1, %v548_v22  ;;  %p521_p0 = pnand %p520_p13, %p514_p10 }
  0xbb   :  { %v264_v34 = vpop.permute.xlu0 %263 }
 0x114   :  { %v397_v15 = vpop.f32.mrb[0].mxu0 }
 0x115   :  { %v160_v16 = vadd.f32 %v397_v15, %v363_v14  ;;  %v154_v17 = vpop.f32.mrb[1].mxu0 }
 0x116   :  { %v155_v18 = vadd.f32 %v363_v14, %v154_v17 }
 0x117   :  { %v164_v20 = vmax.f32 %v160_v16, 0.0 }
 0x118   :  { %v163_v19 = vmax.f32 %v155_v18, 0.0 }
 0x11a   :  { %406 = vmatprep.mubr.msk.f32.mxu1 %vm81_vm0, %v163_v19 }
 0x11b   :  { %407 = vmatmul.mubr.msk.f32.vlgmr.msra.gmra.mrb[0].mxu1 %vm81_vm0, %v164_v20 }
 0x1ee   :  { %v408_v26 = vpop.f32.mrb[0].mxu1 }
 0x1ef   :  { %v254_v27 = vadd.f32 %v408_v26, %v366_v25  ;;  %v248_v28 = vpop.f32.mrb[1].mxu1 }
 0x1f0   :  { %v249_v29 = vadd.f32 %v366_v25, %v248_v28 }
 0x1f1   :  { %v258_v30 = vmax.f32 %v254_v27, 0.0 }
 0x1f2   :  { %v257_v31 = vmax.f32 %v249_v29, 0.0 }
 0x1f4   :  { %v433_v32 = vpack.c.bf16 %v258_v30, %v257_v31 }
 0x1f6   :  { %435 = vmatpush3.bf16.xpose.msk.msra.mxu0 %vm434_vm2, %v433_v32 }
 0x1fd   :  { %414 = vmatmul.mubr.msk.f32.vlgmr.msra.gmra.mrb[2].mxu0 %vm81_vm0, %v259_v33 }
 0x2d0   :  { %v341_v35 = vpop.f32.mrb[2].mxu0 }
 0x2d1   :  { %v342_v36 = vadd.f32 %v341_v35, %v264_v34  ;;  %v415_v37 = vpop.f32.mrb[3].mxu0 }
 0x2d3   :  { %346 = vst.msk [vmem:[#allocation8] sm:$0xf] %vm345_vm3, %v342_v36 }
 0x2d4   :  { %524 = shalt.err (!%p521_p0)
}
 0x2d5   :  { %s525_s22 = scalar_lea.hbm %s681_s7, 64 }
 0x2d6   :  { %p526_p1 = scmp.ne.s32.totalorder %s681_s7, %s525_s22  ;;  %p529_p2 = scmp.lt.u32.totalorder %s525_s22, %s681_s7 }
 0x2d8   :  { %p531_p3 = pnand %p529_p2, %p526_p1 }
 0x2da   :  { %534 = shalt.err (!%p531_p3)
}
 0x2db   :  { %356 = dma.vmem_to_hbm [thread:$0]  %s354_s4, 64, %s681_s7, [#allocation4]  }
 0x2dc   :  { %539 = dma.done.wait [#allocation4], 64  }
 0x2dd   :  { %540 = vsyncadd [#allocation4], 4294967232 }
 0x2de   :  { %360 = vsyncpa [#allocation3], 1 }
 0x2df   :  { %361 = vsyncpa [#allocation6], 1 }
 0x2e0   :  { %362 = vsyncpa [#allocation4], 1 }

</bundles_post_ra>
